<compile_context>
chip_gen: v7x
topology: tpu7x:2x2x1
jax: 0.10.0
libtpu: 0.0.40
codegen_flags: <defaults>
</compile_context>

<pallas_src>
import jax
import jax.numpy as jnp
from jax.experimental import pallas as pl
from jax.experimental.pallas import tpu as pltpu

_LANE = 128


def _round_up(n, m):
    return ((n + m - 1) // m) * m


def _pick_row_tile(hc, requested):
    if requested is not None and hc % requested == 0:
        return requested
    for cand in (128, 64, 32, 16, 8):
        if hc % cand == 0:
            return cand
    return hc


def _conv_im2col_kernel(x_ref, w_ref, b_ref, o_ref):
    # x_ref: (1, THh, Wp, Cin_p)  padded row tile (NHWC, lane-padded channels), f32
    # w_ref: (k, k*Cin_p, Cout_p) per-dy im2col weights (MXU dtype, e.g. bf16)
    # b_ref: (1, Cout_p)          f32 bias
    # o_ref: (1, TH, Wc, Cout_p)  f32 stride-1 conv output tile
    k = w_ref.shape[0]
    cin_p = x_ref.shape[-1]
    _, th, wc, cout_p = o_ref.shape
    mxu_dtype = w_ref.dtype

    x = x_ref[0]                                        # (THh, Wp, Cin_p)

    acc = None
    for dy in range(k):
        # Concatenate the k dx-shifted patches along the (lane-aligned) channel
        # axis -> one fat-K matmul per dy instead of k thin ones.
        slabs = [x[dy:dy + th, dx:dx + wc, :] for dx in range(k)]
        patch = jnp.concatenate(slabs, axis=-1).reshape(th * wc, k * cin_p)
        contrib = jnp.dot(patch.astype(mxu_dtype), w_ref[dy],
                          preferred_element_type=jnp.float32)
        acc = contrib if acc is None else acc + contrib

    acc = acc + b_ref[...]                              # (1, Cout_p) broadcast
    o_ref[0] = acc.reshape(th, wc, cout_p)


def conv_layer(x_nchw, weight_oihw, bias, *, stride=1, row_tile=None,
               mxu_dtype=jnp.bfloat16, vmem_limit_bytes=48 * 1024 * 1024):
    """ReflectionPad2d(k//2) + Conv2d(stride) matching the PyTorch ConvLayer."""
    B, Cin, H, W = x_nchw.shape
    Cout, Cin_w, kh, kw = weight_oihw.shape
    assert Cin == Cin_w and kh == kw, "square kernels / matching channels only"
    k = kh
    pad = k // 2
    in_dtype = x_nchw.dtype

    cin_p = _round_up(Cin, _LANE)
    cout_p = _round_up(Cout, _LANE)

    # NCHW -> NHWC; reflect pad + lane-dense channel pad done in XLA (HBM).
    x = jnp.transpose(x_nchw, (0, 2, 3, 1)).astype(jnp.float32)
    if pad > 0:
        x = jnp.pad(x, ((0, 0), (pad, pad), (pad, pad), (0, 0)), mode="reflect")
    x = jnp.pad(x, ((0, 0), (0, 0), (0, 0), (0, cin_p - Cin)))
    Hp, Wp = H + 2 * pad, W + 2 * pad
    Hc, Wc = Hp - k + 1, Wp - k + 1          # stride-1 ("full-res") conv output

    # Weights: OIHW -> (k, k*Cin_p, Cout_p); K axis ordered (dx, ci) to match
    # the kernel's channel concat.  Cast to the MXU dtype in the wrapper.
    w = jnp.transpose(weight_oihw, (2, 3, 1, 0)).astype(jnp.float32)   # (k,k,Ci,Co)
    w = jnp.pad(w, ((0, 0), (0, 0), (0, cin_p - Cin), (0, cout_p - Cout)))
    w = w.reshape(k, k * cin_p, cout_p).astype(mxu_dtype)
    b = jnp.pad(bias.astype(jnp.float32), (0, cout_p - Cout)).reshape(1, cout_p)

    # Row tiling with a (k-1)-row halo duplicated in HBM (keeps each grid step's
    # VMEM footprint bounded and avoids overlapping BlockSpecs).
    th = _pick_row_tile(Hc, row_tile)
    n_tiles = Hc // th
    thh = th + k - 1
    x_tiles = jnp.stack([x[:, t * th: t * th + thh] for t in range(n_tiles)],
                        axis=1)
    x_tiles = x_tiles.reshape(B * n_tiles, thh, Wp, cin_p)

    out_full = pl.pallas_call(
        _conv_im2col_kernel,
        out_shape=jax.ShapeDtypeStruct((B, Hc, Wc, cout_p), jnp.float32),
        grid=(B, n_tiles),
        in_specs=[
            pl.BlockSpec((1, thh, Wp, cin_p),
                         lambda bb, t, n=n_tiles: (bb * n + t, 0, 0, 0)),
            pl.BlockSpec((k, k * cin_p, cout_p), lambda bb, t: (0, 0, 0)),
            pl.BlockSpec((1, cout_p), lambda bb, t: (0, 0)),
        ],
        out_specs=pl.BlockSpec((1, th, Wc, cout_p), lambda bb, t: (bb, t, 0, 0)),
        compiler_params=pltpu.CompilerParams(
            dimension_semantics=("parallel", "parallel"),
            vmem_limit_bytes=vmem_limit_bytes),
    )(x_tiles, w, b)

    # Strided conv == subsample of the stride-1 conv; drop channel padding.
    out = out_full[:, ::stride, ::stride, :Cout]
    return jnp.transpose(out, (0, 3, 1, 2)).astype(in_dtype)   # NHWC -> NCHW


def _reference_forward(x, w, b, stride):
    """Pure-JAX (XLA, f32) reference matching the PyTorch ConvLayer, NCHW."""
    pad = w.shape[-1] // 2
    xp = jnp.pad(x, ((0, 0), (0, 0), (pad, pad), (pad, pad)), mode="reflect")
    y = jax.lax.conv_general_dilated(
        xp, w, window_strides=(stride, stride), padding="VALID",
        dimension_numbers=("NCHW", "OIHW", "NCHW"))
    return y + b[None, :, None, None]


if __name__ == "__main__":
    B, Cin, Cout, H, W, K = 2, 4, 8, 16, 16, 3
    key = jax.random.PRNGKey(0)
    k1, k2, k3 = jax.random.split(key, 3)
    fan_in = Cin * K * K
    bound = 1.0 / (fan_in ** 0.5)
    weight = jax.random.uniform(k1, (Cout, Cin, K, K), jnp.float32, -bound, bound)
    bias = jax.random.uniform(k2, (Cout,), jnp.float32, -bound, bound)
    x = jax.random.normal(k3, (B, Cin, H, W), jnp.float32)

    # stride=1 with explicit row tiling (2 row tiles), stride=2 full-height tile.
    for stride, row_tile in ((1, 8), (2, None)):
        out = jax.block_until_ready(
            conv_layer(x, weight, bias, stride=stride, row_tile=row_tile))
        ref = jax.block_until_ready(_reference_forward(x, weight, bias, stride))
        assert out.shape == ref.shape and out.dtype == x.dtype
        # bf16 MXU operands with f32 accumulation -> tolerance loosened vs the
        # pure-f32 XLA reference.
        if not jnp.allclose(out, ref, rtol=3e-2, atol=3e-2):
            max_err = float(jnp.max(jnp.abs(out - ref)))
            raise AssertionError(
                f"stride={stride}: mismatch vs reference, max abs err = {max_err}")
    print("KERNEL_OK")
</pallas_src>

<mosaic_0001>
module attributes {stable_mosaic.version = 11 : i64} {
  func.func @_conv_im2col_kernel(%arg0: i32, %arg1: i32, %arg2: memref<1x10x18x128xf32, #tpu.memory_space<vmem>>, %arg3: memref<3x384x128xbf16, #tpu.memory_space<vmem>>, %arg4: memref<1x128xf32, #tpu.memory_space<vmem>>, %arg5: memref<1x8x16x128xf32, #tpu.memory_space<vmem>>) attributes {dimension_semantics = [#tpu.dimension_semantics<parallel>, #tpu.dimension_semantics<parallel>], iteration_bounds = array<i64: 2, 2>, scalar_prefetch = 0 : i64, scratch_operands = 0 : i64, tpu.core_type = #tpu.core_type<tc>, window_params = [{transform_indices = @transform_0, window_bounds = array<i64: 1, 10, 18, 128>}, {pipeline_mode = #tpu.pipeline_mode<synchronous>, transform_indices = @transform_1, window_bounds = array<i64: 3, 384, 128>}, {pipeline_mode = #tpu.pipeline_mode<synchronous>, transform_indices = @transform_2, window_bounds = array<i64: 1, 128>}, {transform_indices = @transform_3, window_bounds = array<i64: 1, 8, 16, 128>}]} {
    %c0 = arith.constant 0 : index
    %c0_0 = arith.constant 0 : index
    %c0_1 = arith.constant 0 : index
    %c0_2 = arith.constant 0 : index
    %0 = vector.load %arg2[%c0, %c0_0, %c0_1, %c0_2] : memref<1x10x18x128xf32, #tpu.memory_space<vmem>>, vector<1x10x18x128xf32>
    %1 = vector.shape_cast %0 : vector<1x10x18x128xf32> to vector<10x18x128xf32>
    %2 = vector.extract_strided_slice %1 {offsets = [0, 0, 0], sizes = [8, 16, 128], strides = [1, 1, 1]} : vector<10x18x128xf32> to vector<8x16x128xf32>
    %3 = vector.extract_strided_slice %1 {offsets = [0, 1, 0], sizes = [8, 16, 128], strides = [1, 1, 1]} : vector<10x18x128xf32> to vector<8x16x128xf32>
    %4 = vector.extract_strided_slice %1 {offsets = [0, 2, 0], sizes = [8, 16, 128], strides = [1, 1, 1]} : vector<10x18x128xf32> to vector<8x16x128xf32>
    %5 = tpu.concatenate %2, %3, %4 in 2 : vector<8x16x128xf32>, vector<8x16x128xf32>, vector<8x16x128xf32> -> vector<8x16x384xf32>
    %6 = vector.shape_cast %5 : vector<8x16x384xf32> to vector<128x384xf32>
    %7 = arith.truncf %6 : vector<128x384xf32> to vector<128x384xbf16>
    %c0_3 = arith.constant 0 : index
    %c0_4 = arith.constant 0 : index
    %c0_5 = arith.constant 0 : index
    %8 = vector.load %arg3[%c0_3, %c0_4, %c0_5] : memref<3x384x128xbf16, #tpu.memory_space<vmem>>, vector<1x384x128xbf16>
    %9 = vector.shape_cast %8 : vector<1x384x128xbf16> to vector<384x128xbf16>
    %cst = arith.constant dense<0.000000e+00> : vector<128x128xf32>
    %10 = tpu.matmul %7, %9, %cst {dimension_numbers = #tpu.dot_dimension_numbers<[1], [0], [0], [1], [0, 0, 1, 1], [], []>} : vector<128x384xbf16>, vector<384x128xbf16>, vector<128x128xf32> -> vector<128x128xf32>
    %11 = vector.extract_strided_slice %1 {offsets = [1, 0, 0], sizes = [8, 16, 128], strides = [1, 1, 1]} : vector<10x18x128xf32> to vector<8x16x128xf32>
    %12 = vector.extract_strided_slice %1 {offsets = [1, 1, 0], sizes = [8, 16, 128], strides = [1, 1, 1]} : vector<10x18x128xf32> to vector<8x16x128xf32>
    %13 = vector.extract_strided_slice %1 {offsets = [1, 2, 0], sizes = [8, 16, 128], strides = [1, 1, 1]} : vector<10x18x128xf32> to vector<8x16x128xf32>
    %14 = tpu.concatenate %11, %12, %13 in 2 : vector<8x16x128xf32>, vector<8x16x128xf32>, vector<8x16x128xf32> -> vector<8x16x384xf32>
    %15 = vector.shape_cast %14 : vector<8x16x384xf32> to vector<128x384xf32>
    %16 = arith.truncf %15 : vector<128x384xf32> to vector<128x384xbf16>
    %c1 = arith.constant 1 : index
    %c0_6 = arith.constant 0 : index
    %c0_7 = arith.constant 0 : index
    %17 = vector.load %arg3[%c1, %c0_6, %c0_7] : memref<3x384x128xbf16, #tpu.memory_space<vmem>>, vector<1x384x128xbf16>
    %18 = vector.shape_cast %17 : vector<1x384x128xbf16> to vector<384x128xbf16>
    %cst_8 = arith.constant dense<0.000000e+00> : vector<128x128xf32>
    %19 = tpu.matmul %16, %18, %cst_8 {dimension_numbers = #tpu.dot_dimension_numbers<[1], [0], [0], [1], [0, 0, 1, 1], [], []>} : vector<128x384xbf16>, vector<384x128xbf16>, vector<128x128xf32> -> vector<128x128xf32>
    %20 = arith.addf %10, %19 : vector<128x128xf32>
    %21 = vector.extract_strided_slice %1 {offsets = [2, 0, 0], sizes = [8, 16, 128], strides = [1, 1, 1]} : vector<10x18x128xf32> to vector<8x16x128xf32>
    %22 = vector.extract_strided_slice %1 {offsets = [2, 1, 0], sizes = [8, 16, 128], strides = [1, 1, 1]} : vector<10x18x128xf32> to vector<8x16x128xf32>
    %23 = vector.extract_strided_slice %1 {offsets = [2, 2, 0], sizes = [8, 16, 128], strides = [1, 1, 1]} : vector<10x18x128xf32> to vector<8x16x128xf32>
    %24 = tpu.concatenate %21, %22, %23 in 2 : vector<8x16x128xf32>, vector<8x16x128xf32>, vector<8x16x128xf32> -> vector<8x16x384xf32>
    %25 = vector.shape_cast %24 : vector<8x16x384xf32> to vector<128x384xf32>
    %26 = arith.truncf %25 : vector<128x384xf32> to vector<128x384xbf16>
    %c2 = arith.constant 2 : index
    %c0_9 = arith.constant 0 : index
    %c0_10 = arith.constant 0 : index
    %27 = vector.load %arg3[%c2, %c0_9, %c0_10] : memref<3x384x128xbf16, #tpu.memory_space<vmem>>, vector<1x384x128xbf16>
    %28 = vector.shape_cast %27 : vector<1x384x128xbf16> to vector<384x128xbf16>
    %cst_11 = arith.constant dense<0.000000e+00> : vector<128x128xf32>
    %29 = tpu.matmul %26, %28, %cst_11 {dimension_numbers = #tpu.dot_dimension_numbers<[1], [0], [0], [1], [0, 0, 1, 1], [], []>} : vector<128x384xbf16>, vector<384x128xbf16>, vector<128x128xf32> -> vector<128x128xf32>
    %30 = arith.addf %20, %29 : vector<128x128xf32>
    %c0_12 = arith.constant 0 : index
    %c0_13 = arith.constant 0 : index
    %31 = vector.load %arg4[%c0_12, %c0_13] : memref<1x128xf32, #tpu.memory_space<vmem>>, vector<1x128xf32>
    %32 = vector.broadcast %31 : vector<1x128xf32> to vector<128x128xf32>
    %33 = arith.addf %30, %32 : vector<128x128xf32>
    %34 = vector.shape_cast %33 : vector<128x128xf32> to vector<8x16x128xf32>
    %c0_14 = arith.constant 0 : index
    %c0_15 = arith.constant 0 : index
    %c0_16 = arith.constant 0 : index
    %c0_17 = arith.constant 0 : index
    %35 = vector.load %arg5[%c0_14, %c0_15, %c0_16, %c0_17] : memref<1x8x16x128xf32, #tpu.memory_space<vmem>>, vector<1x8x16x128xf32>
    %36 = vector.shape_cast %35 : vector<1x8x16x128xf32> to vector<8x16x128xf32>
    %37 = vector.shape_cast %34 : vector<8x16x128xf32> to vector<1x8x16x128xf32>
    tpu.vector_store %arg5[%c0_14, %c0_15, %c0_16, %c0_17], %37 {strides = array<i32>} : memref<1x8x16x128xf32, #tpu.memory_space<vmem>>, vector<1x8x16x128xf32>,
    return
  }
  func.func @transform_0(%arg0: i32, %arg1: i32) -> (i32, i32, i32, i32) {
    %c2_i32 = arith.constant 2 : i32
    %0 = arith.muli %arg0, %c2_i32 : i32
    %1 = arith.addi %0, %arg1 : i32
    %c0_i32 = arith.constant 0 : i32
    %c0_i32_0 = arith.constant 0 : i32
    %c0_i32_1 = arith.constant 0 : i32
    %c0_i32_2 = arith.constant 0 : i32
    return %1, %c0_i32, %c0_i32_0, %c0_i32_1 : i32, i32, i32, i32
  }
  func.func @transform_1(%arg0: i32, %arg1: i32) -> (i32, i32, i32) {
    %c0_i32 = arith.constant 0 : i32
    %c0_i32_0 = arith.constant 0 : i32
    %c0_i32_1 = arith.constant 0 : i32
    %c0_i32_2 = arith.constant 0 : i32
    return %c0_i32, %c0_i32_0, %c0_i32_1 : i32, i32, i32
  }
  func.func @transform_2(%arg0: i32, %arg1: i32) -> (i32, i32) {
    %c0_i32 = arith.constant 0 : i32
    %c0_i32_0 = arith.constant 0 : i32
    %c0_i32_1 = arith.constant 0 : i32
    return %c0_i32, %c0_i32_0 : i32, i32
  }
  func.func @transform_3(%arg0: i32, %arg1: i32) -> (i32, i32, i32, i32) {
    %c0_i32 = arith.constant 0 : i32
    %c0_i32_0 = arith.constant 0 : i32
    %c0_i32_1 = arith.constant 0 : i32
    return %arg0, %arg1, %c0_i32, %c0_i32_0 : i32, i32, i32, i32
  }
}

</mosaic_0001>

<bundles_post_ra>
// kernel: tpu_custom_call.1
= control target key start
LH: loop header
LB: loop body
LE: loop exit
PB: predicated region body
PF: predicated region fallthrough
CT: control target
= control target key end

     0   :  { %8 = vsyncpa [#allocation3], 0  ;;  %s3395_s0 = inlined_call_operand.vmem [shape: f32[4,10,18,128], index: 0, kind: input, shape index: {}]   ;;  %s3396_s1 = inlined_call_operand.vmem [shape: bf16[3,384,128], index: 1, kind: input, shape index: {}]   ;;  %s3397_s2 = inlined_call_operand.vmem [shape: f32[1,128], index: 2, kind: input, shape index: {}]   ;;  %s3398_s3 = inlined_call_operand.hbm [shape: f32[2,16,16,128], index: 3, kind: output, shape index: {}]  }
   0x1   :  { %10 = vsyncpa [#allocation3 + $0x1], 0  ;;  %s2623_s12 = smov 0   ;;  %s2625_s13 = smov 0  }
   0x2   :  { %s2627_s14 = smov 0   ;;  %s2629_s15 = smov 0  }
   0x3   :  { %s2631_s16 = smov 0   ;;  %s2633_s17 = smov 0  }
   0x4   :  { %s2635_s18 = smov 0   ;;  %s2637_s19 = smov 0  }
   0x5 LB: > { %s1739_s20 = sadd.s32 4294967295, %s2598_s19   ;;  %s1740_s21 = sadd.s32 4294967294, %s2598_s19   ;;  %s2598_s19 = sphi %s2637_s19, %s16_s19   ;;  %s2594_s18 = sphi %s2635_s18, %s3407_s18   ;;  %s2590_s17 = sphi %s2633_s17, %s3406_s17   ;;  %s2586_s16 = sphi %s2631_s16, %s3405_s16   ;;  %s2582_s15 = sphi %s2629_s15, %s3404_s15   ;;  %s2578_s14 = sphi %s2627_s14, %s3403_s14   ;;  %s2574_s13 = sphi %s2625_s13, %s3402_s13   ;;  %s2570_s12 = sphi %s2623_s12, %s3401_s12  }
   0x6   : > { %s25_s22 = sadd.s32 1, %s2590_s17  ;;  %s28_s23 = sadd.s32 1, %s2594_s18 }
   0x7   : > { %p26_p0 = scmp.ge.s32.totalorder %s25_s22, 2  ;;  %p119_p1 = scmp.ne.s32.totalorder %s2578_s14, %s2574_s13 }
   0x8   : > { %p120_p2 = scmp.eq.s32.totalorder %s1739_s20, 3  ;;  %p125_p5 = scmp.ne.s32.totalorder %s2574_s13, %s2570_s12 }
   0x9   : > { %s3409_s22 = smov (%p26_p0, %s25_s22), 0  ;;  %s3411_s23 = smov (!%p26_p0, %s28_s23), %s2594_s18 }
   0xa   : > { %s105_s24 = ssub.s32 %s2590_s17, %s3409_s22  ;;  %p2674_p3 = por %p120_p2, %p119_p1 }
   0xb   : > { %p30_p4 = scmp.ge.s32.totalorder %s3411_s23, 2  ;;  %p126_p6 = scmp.eq.s32.totalorder %s1740_s21, 3 }
   0xc   : > { %p1745_p7 = scmp.ge.s32.totalorder %s2598_s19, 1  ;;  %p162_p9 = scmp.lt.s32.totalorder %s2598_s19, 5 }
   0xd   : > { %s3413_s23 = smov (%p30_p4, %s3411_s23), 0  ;;  %p2683_p8 = por %p126_p6, %p125_p5 }
   0xe   : > { %s104_s27 = ssub.s32 %s2594_s18, %s3413_s23  ;;  %s109_s28 = sadd.s32 1, %s2578_s14 }
   0xf   : > { %s106_s29 = sor.u32 %s105_s24, %s104_s27  ;;  %p163_p10 = pnand %p1745_p7, %p162_p9 }
  0x10   : > { %p107_p11 = scmp.eq.s32.totalorder %s106_s29, 0  ;;  %v2432_v0 = vld [vmem:[%s3396_s1 + $0x100] sm:$0xff] (!%p163_p10)   ;;  %v2435_v3 = vld [vmem:[%s3396_s1 + $0x108] sm:$0xff] (!%p163_p10)   ;;  %s1747_s20 = sshll.u32 (!%p163_p10), %s2586_s16, 1  ;;  %v2438_v6 = vld [vmem:[%s3396_s1 + $0x110] sm:$0xff] (!%p163_p10)   ;;  %vm253_vm0 = vcmask (!%p163_p10), 1046528  }
  0x11   : > { %166 = sbr.rel (%p163_p10) target bundleno = 421 (0x1a5), region = 32  ;;  %v2433_v1 = vld [vmem:[%s3396_s1 + $0x140] sm:$0xff] (!%p163_p10)   ;;  %1926 = vmatprep.subr.bf16.mxu0 (!%p163_p10), %v2432_v0  ;;  %v2436_v4 = vld [vmem:[%s3396_s1 + $0x148] sm:$0xff] (!%p163_p10)   ;;  %s189_s5 = sadd.s32 (!%p163_p10), %s2582_s15, %s1747_s20  ;;  %v2439_v7 = vld [vmem:[%s3396_s1 + $0x150] sm:$0xff] (!%p163_p10)   ;;  %vm310_vm1 = vcmask (!%p163_p10), 1045504  }
  0x12   : > { %s2692_s30 = scalar_select %p107_p11, %s2578_s14, %s109_s28  }
  0x13   : > { %v2434_v2 = vld [vmem:[%s3396_s1 + $0xc0] sm:$0xff] (!%p163_p10)   ;;  %2166 = vmatprep.subr.bf16.mxu1 (!%p163_p10), %v2433_v1  ;;  %v2437_v5 = vld [vmem:[%s3396_s1 + $0xc8] sm:$0xff] (!%p163_p10)   ;;  %v2440_v8 = vld [vmem:[%s3396_s1 + $0xd0] sm:$0xff] (!%p163_p10)   ;;  %p190_p12 = scmp.lt.s32.totalorder (!%p163_p10), %s189_s5, 3  ;;  %s185_s7 = sand.u32 (!%p163_p10), 1, %s2574_s13  }
  0x14   : > { %1927 = vmatpush3.bf16.msra.mxu0 (!%p163_p10), %v2434_v2  ;;  %2167 = vmatpush3.bf16.msra.mxu1 (!%p163_p10), %v2433_v1  ;;  %v2441_v9 = vld [vmem:[%s3396_s1 + $0x118] sm:$0xff] (!%p163_p10)   ;;  %v2444_v12 = vld [vmem:[%s3396_s1 + $0x120] sm:$0xff] (!%p163_p10)   ;;  %v2447_v15 = vld [vmem:[%s3396_s1 + $0x128] sm:$0xff] (!%p163_p10)   ;;  %s1746_s8 = sshll.u32 (!%p163_p10), %s185_s7, 7  ;;  %s1925_s11 = sshll.u32 (!%p163_p10), %s2582_s15, 4 }
  0x15   : > { %1928 = vmatprep.subr.bf16.mxu0 (!%p163_p10), %v2435_v3  ;;  %2168 = vmatprep.subr.bf16.mxu1 (!%p163_p10), %v2436_v4  ;;  %v2442_v10 = vld [vmem:[%s3396_s1 + $0x158] sm:$0xff] (!%p163_p10)   ;;  %v2445_v13 = vld [vmem:[%s3396_s1 + $0x160] sm:$0xff] (!%p163_p10)   ;;  %v2448_v16 = vld [vmem:[%s3396_s1 + $0x168] sm:$0xff] (!%p163_p10)   ;;  %s1921_s21 = sshll.u32 (!%p163_p10), %s2586_s16, 5  ;;  %s3295_s20 = scalar_lea.vmem (!%p163_p10), [#allocation2], %s1746_s8 }
  0x16   : > { %v2443_v11 = vld [vmem:[%s3396_s1 + $0xd8] sm:$0xff] (!%p163_p10)   ;;  %v2446_v14 = vld [vmem:[%s3396_s1 + $0xe0] sm:$0xff] (!%p163_p10)   ;;  %v2449_v17 = vld [vmem:[%s3396_s1 + $0xe8] sm:$0xff] (!%p163_p10)   ;;  %s3307_s15 = sadd.s32 (!%p163_p10), %s1925_s11, %s1921_s21  ;;  %s1663_s27 = sshll.u32 (!%p163_p10), %s3295_s20, 4  ;;  %s3331_s27 = int_to_ptr.vmem [resolvable:$true] %s1663_s27 }
  0x17   : > { %v2450_v18 = vld [vmem:[%s3396_s1 + $0x130] sm:$0xff] (!%p163_p10)   ;;  %v2453_v21 = vld [vmem:[%s3396_s1 + $0x138] sm:$0xff] (!%p163_p10)   ;;  %v2456_v44 = vld [vmem:[%s3396_s1 + $0x40] sm:$0xff] (!%p163_p10)   ;;  %s1922_s16 = sshll.u32 (!%p163_p10), %s3307_s15, 7  ;;  %s3343_s4 = scalar_lea.sflag (!%p163_p10), [#allocation3], %s185_s7 }
  0x18   : > { %1929 = vmatpush3.bf16.msra.mxu0 %v2437_v5  ;;  %2169 = vmatpush3.bf16.msra.mxu1 %v2436_v4  ;;  %s3415_s5 = smov (!%p190_p12, %s189_s5), 3  ;;  %v2451_v19 = vld [vmem:[%s3396_s1 + $0x170] sm:$0xff]   ;;  %v2454_v22 = vld [vmem:[%s3396_s1 + $0x178] sm:$0xff]   ;;  %v2457_v49 = vld [vmem:[%s3396_s1 + $0x1c0] sm:$0xff]   ;;  %s3329_s29 = scalar_lea.hbm %s3398_s3, %s1922_s16 }
  0x19   : > { %1930 = vmatprep.subr.bf16.mxu0 %v2438_v6  ;;  %2170 = vmatprep.subr.bf16.mxu1 %v2439_v7  ;;  %s2358_s24 = smul.u32 240, %s3415_s5  ;;  %v2452_v20 = vld [vmem:[%s3396_s1 + $0xf0] sm:$0xff]   ;;  %v2455_v32 = vld [vmem:[%s3396_s1 + $0xf8] sm:$0xff]   ;;  %v2458_v51 = vld [vmem:[%s3396_s1] sm:$0xff]   ;;  %s2600_s6 = smov [#allocation2]  }
  0x1a   : > { %v2459_v55 = vld [vmem:[%s3396_s1 + $0x180] sm:$0xff]   ;;  %v2460_v57 = vld [vmem:[%s3396_s1 + $0x48] sm:$0xff]   ;;  %s2508_s8 = sshll.u32 %s2600_s6, 4  ;;  %s2509_s8 = int_to_ptr.vmem [resolvable:$false] %s2508_s8 }
  0x1b   : > { %s2759_s5 = scalar_lea.vmem %s3395_s0, %s2358_s24  ;;  %v2461_v63 = vld [vmem:[%s3396_s1 + $0x8] sm:$0xff]   ;;  %s2510_s9 = scalar_lea.vmem %s2509_s8, 4096 }
  0x1c   : > { %1931 = vmatpush3.bf16.msra.mxu0 %v2440_v8  ;;  %2171 = vmatpush3.bf16.msra.mxu1 %v2439_v7  ;;  %v202_v23 = vld [vmem:[%s2759_s5 + $0x18] sm:$0xff]  ;;  %v203_v24 = vld [vmem:[%s2759_s5 + $0x20] sm:$0xff]  ;;  %v204_v25 = vld [vmem:[%s2759_s5 + $0x28] sm:$0x3]  ;;  %p2511_p2 = scmp.lt.s32.totalorder %s3331_s27, %s2509_s8 }
  0x1d   : > { %1932 = vmatprep.subr.bf16.mxu0 %v2441_v9  ;;  %2172 = vmatprep.subr.bf16.mxu1 %v2442_v10  ;;  %v259_v26 = vrot.slane %v202_v23, 1  ;;  %v260_v27 = vrot.slane %v203_v24, 1  ;;  %v262_v28 = vrot.slane %v204_v25, 1  ;;  %v316_v29 = vrot.slane %v202_v23, 2  ;;  %v2774_v30 = vld [vmem:[%s2759_s5 + $0x30] sm:$0xff]  ;;  %v2777_v31 = vld [vmem:[%s2759_s5 + $0x38] sm:$0xff] }
  0x1e   : > { %v317_v33 = vrot.slane %v203_v24, 2  ;;  %v319_v34 = vrot.slane %v204_v25, 2  ;;  %v207_v35 = vld [vmem:[%s2759_s5 + $0x40] sm:$0x3]  ;;  %v321_v36 = vrot.slane %v2774_v30, 2  ;;  %v322_v39 = vrot.slane %v2777_v31, 2 }
  0x1f   : > { %v261_v37 = vsel %vm253_vm0, %v259_v26, %v260_v27  ;;  %v263_v38 = vsel %vm253_vm0, %v260_v27, %v262_v28  ;;  %v324_v40 = vrot.slane %v207_v35, 2  ;;  %v264_v45 = vrot.slane %v2774_v30, 1  ;;  %v2823_v60 = vld [vmem:[%s2759_s5 + $0x48] sm:$0xff]  ;;  %v2826_v61 = vld [vmem:[%s2759_s5 + $0x50] sm:$0xff]  ;;  %v210_v62 = vld [vmem:[%s2759_s5 + $0x58] sm:$0x3] }
  0x20   : > { %1933 = vmatpush3.bf16.msra.mxu0 %v2443_v11  ;;  %2173 = vmatpush3.bf16.msra.mxu1 %v2442_v10  ;;  %v2787_v41 = vpack.c.bf16 %v263_v38, %v261_v37  ;;  %v318_v42 = vsel %vm310_vm1, %v316_v29, %v317_v33  ;;  %v320_v43 = vsel %vm310_vm1, %v317_v33, %v319_v34  ;;  %v265_v50 = vrot.slane %v2777_v31, 1  ;;  %v2835_v3 = vld [vmem:[%s2759_s5 + $0x60] sm:$0xff]  ;;  %v2838_v4 = vld [vmem:[%s2759_s5 + $0x68] sm:$0xff]  ;;  %v213_v5 = vld [vmem:[%s2759_s5 + $0x70] sm:$0x3] }
  0x21   : > { %1934 = vmatprep.subr.bf16.mxu0 %v2444_v12  ;;  %2174 = vmatprep.subr.bf16.mxu1 %v2445_v13  ;;  %v2795_v46 = vpack.c.bf16 %v320_v43, %v318_v42  ;;  %v323_v47 = vsel %vm310_vm1, %v321_v36, %v322_v39  ;;  %v325_v48 = vsel %vm310_vm1, %v322_v39, %v324_v40  ;;  %v267_v52 = vrot.slane %v207_v35, 1  ;;  %v2462_v8 = vld [vmem:[%s3396_s1 + $0x50] sm:$0xff]   ;;  %v2463_v12 = vld [vmem:[%s3396_s1 + $0x1c8] sm:$0xff]   ;;  %v2878_v25 = vld [vmem:[%s2759_s5 + $0x78] sm:$0xff] }
  0x22   : > { %684 = vmatprep.mubr.bf16.mxu0 %v2787_v41  ;;  %v2808_v53 = vpack.c.bf16 %v203_v24, %v202_v23  ;;  %v2810_v54 = vpack.c.bf16 %v325_v48, %v323_v47  ;;  %v266_v56 = vsel %vm253_vm0, %v264_v45, %v265_v50  ;;  %v326_v0 = vrot.slane %v2823_v60, 2  ;;  %v2466_v23 = vld [vmem:[%s3396_s1 + $0x58] sm:$0xff]   ;;  %v2881_v26 = vld [vmem:[%s2759_s5 + $0x80] sm:$0xff]  ;;  %v2895_v35 = vld [vmem:[%s2759_s5 + $0x90] sm:$0xff] }
  0x23   : > { %2182 = vmatprep.mubr.bf16.mxu1 %v2795_v46  ;;  %v268_v58 = vsel %vm253_vm0, %v265_v50, %v267_v52  ;;  %v327_v1 = vrot.slane %v2826_v61, 2  ;;  %v329_v2 = vrot.slane %v210_v62, 2  ;;  %v331_v6 = vrot.slane %v2835_v3, 2  ;;  %v2898_v36 = vld [vmem:[%s2759_s5 + $0x98] sm:$0xff]  ;;  %v2906_v39 = vld [vmem:[%s2759_s5 + $0xa0] sm:$0x3] }
  0x24   : > { %1935 = vmatpush3.bf16.msra.mxu0 %v2446_v14  ;;  %2175 = vmatpush3.bf16.msra.mxu1 %v2445_v13  ;;  %v2820_v59 = vpack.c.bf16 %v268_v58, %v266_v56  ;;  %v332_v7 = vrot.slane %v2838_v4, 2  ;;  %v334_v11 = vrot.slane %v213_v5, 2  ;;  %v274_v27 = vrot.slane %v2835_v3, 1  ;;  %v2468_v43 = vld [vmem:[%s3396_s1 + $0x60] sm:$0xff]   ;;  %v2469_v47 = vld [vmem:[%s3396_s1 + $0x1d0] sm:$0xff]  }
  0x25   : > { %1936 = vmatprep.subr.bf16.mxu0 %v2447_v15  ;;  %2176 = vmatprep.subr.bf16.mxu1 %v2448_v16  ;;  %v328_v9 = vsel %vm310_vm1, %v326_v0, %v327_v1  ;;  %v330_v10 = vsel %vm310_vm1, %v327_v1, %v329_v2  ;;  %v275_v28 = vrot.slane %v2838_v4, 1  ;;  %v277_v29 = vrot.slane %v213_v5, 1  ;;  %v2471_v58 = vld [vmem:[%s3396_s1 + $0x190] sm:$0xff]   ;;  %v2946_v0 = vld [vmem:[%s2759_s5 + $0xa8] sm:$0xff] }
  0x26   : > { %v2854_v13 = vpack.c.bf16 %v330_v10, %v328_v9  ;;  %v333_v14 = vsel %vm310_vm1, %v331_v6, %v332_v7  ;;  %v335_v15 = vsel %vm310_vm1, %v332_v7, %v334_v11  ;;  %v336_v33 = vrot.slane %v2878_v25, 2  ;;  %v2473_v5 = vld [vmem:[%s3396_s1 + $0x28] sm:$0xff]   ;;  %v2954_v6 = vld [vmem:[%s2759_s5 + $0xb0] sm:$0xff]  ;;  %v2957_v7 = vld [vmem:[%s2759_s5 + $0xb8] sm:$0x3] }
  0x27   : > { %v337_v34 = vrot.slane %v2881_v26, 2  ;;  %v341_v40 = vrot.slane %v2895_v35, 2  ;;  %v342_v42 = vrot.slane %v2898_v36, 2  ;;  %v344_v45 = vrot.slane %v2906_v39, 2  ;;  %v2961_v9 = vld [vmem:[%s2759_s5 + $0xc0] sm:$0xff] }
  0x28   : > { %1937 = vmatpush3.bf16.msra.mxu0 %v2449_v17  ;;  %2177 = vmatpush3.bf16.msra.mxu1 %v2448_v16  ;;  %v269_v16 = vrot.slane %v2823_v60, 1  ;;  %v2862_v17 = vpack.c.bf16 %v2777_v31, %v2774_v30  ;;  %v2467_v30 = vld [vmem:[%s3396_s1 + $0x18] sm:$0xff]   ;;  %v276_v48 = vsel %vm253_vm0, %v274_v27, %v275_v28  ;;  %v2928_v56 = vpack.c.bf16 %v2826_v61, %v2823_v60 }
  0x29   : > { %1938 = vmatprep.subr.bf16.mxu0 %v2450_v18  ;;  %2178 = vmatprep.subr.bf16.mxu1 %v2451_v19  ;;  %v2864_v18 = vpack.c.bf16 %v335_v15, %v333_v14  ;;  %v343_v50 = vsel %vm310_vm1, %v341_v40, %v342_v42  ;;  %v279_v60 = vrot.slane %v2878_v25, 1  ;;  %v280_v1 = vrot.slane %v2881_v26, 1  ;;  %v2971_v14 = vld [vmem:[%s2759_s5 + $0xd0] sm:$0x3] }
  0x2a   : > { %v347_v10 = vrot.slane %v2954_v6, 2  ;;  %v349_v11 = vrot.slane %v2957_v7, 2  ;;  %v449_v15 = vrot.slane %v2961_v9, 2 }
  0x2c   : > { %1939 = vmatpush3.bf16.msra.mxu0 %v2452_v20  ;;  %2179 = vmatpush3.bf16.msra.mxu1 %v2451_v19  ;;  %v2465_v19 = vld [vmem:[%s3396_s1 + $0x188] sm:$0xff]   ;;  %v270_v20 = vrot.slane %v2826_v61, 1 }
  0x2d   : > { %1940 = vmatprep.subr.bf16.mxu0 %v2453_v21  ;;  %2180 = vmatprep.subr.bf16.mxu1 %v2454_v22  ;;  %v2464_v21 = vld [vmem:[%s3396_s1 + $0x10] sm:$0xff]   ;;  %v2472_v61 = vld [vmem:[%s3396_s1 + $0x68] sm:$0xff]  }
  0x2e   : > { %v271_v24 = vsel %vm253_vm0, %v269_v16, %v270_v20 }
  0x30   : > { %1941 = vmatpush3.bf16.msra.mxu0 %v2455_v32  ;;  %2181 = vmatpush3.bf16.msra.mxu1 %v2454_v22  ;;  %v272_v22 = vrot.slane %v210_v62, 1  ;;  %v2890_v32 = vld [vmem:[%s2759_s5 + $0x88] sm:$0x3]  ;;  %v2470_v62 = vld [vmem:[%s3396_s1 + $0x20] sm:$0xff]  }
  0x31   : > { %2006 = vmatprep.subr.bf16.mxu1 %v2456_v44  ;;  %2086 = vmatprep.subr.bf16.mxu0 %v2457_v49  ;;  %v339_v38 = vrot.slane %v2890_v32, 2  ;;  %v338_v44 = vsel %vm310_vm1, %v336_v33, %v337_v34  ;;  %v282_v2 = vrot.slane %v2890_v32, 1  ;;  %v2476_v33 = vld [vmem:[%s3396_s1 + $0x30] sm:$0xff]  }
  0x32   : > { %v273_v31 = vsel %vm253_vm0, %v270_v20, %v272_v22  ;;  %v2474_v22 = vld [vmem:[%s3396_s1 + $0x70] sm:$0xff]  }
  0x33   : > { %685 = vmatmul.mubr.bf16.vlgmr.msra.gmra.mrb[0].mxu0 %v2808_v53  ;;  %2183 = vmatmul.mubr.bf16.vlgmr.msra.gmra.mrb[0].mxu1 %v2810_v54  ;;  %v2902_v37 = vpack.c.bf16 %v273_v31, %v271_v24  ;;  %v340_v49 = vsel %vm310_vm1, %v337_v34, %v339_v38  ;;  %v283_v24 = vsel %vm253_vm0, %v280_v1, %v282_v2  ;;  %v284_v34 = vrot.slane %v2895_v35, 1  ;;  %v2477_v38 = vld [vmem:[%s3396_s1 + $0x198] sm:$0xff]  }
  0x34   : > { %2007 = vmatpush3.bf16.msra.mxu1 %v2458_v51  ;;  %2087 = vmatpush3.bf16.msra.mxu0 %v2459_v55  ;;  %v278_v51 = vsel %vm253_vm0, %v275_v28, %v277_v29  ;;  %v2923_v52 = vpack.c.bf16 %v340_v49, %v338_v44  ;;  %v345_v55 = vsel %vm310_vm1, %v342_v42, %v344_v45  ;;  %v287_v42 = vrot.slane %v2906_v39, 1  ;;  %v3016_v44 = vld [vmem:[%s2759_s5] sm:$0xff]  ;;  %v3019_v45 = vld [vmem:[%s2759_s5 + $0x8] sm:$0xff] }
  0x35   : > { %2008 = vmatprep.subr.bf16.mxu1 %v2460_v57  ;;  %692 = vmatprep.mubr.bf16.mxu0 %v2820_v59  ;;  %v2930_v57 = vpack.c.bf16 %v345_v55, %v343_v50  ;;  %v2993_v31 = vpack.c.bf16 %v2838_v4, %v2835_v3  ;;  %v285_v3 = vrot.slane %v2898_v36, 1  ;;  %v2478_v4 = vld [vmem:[%s3396_s1 + $0x78] sm:$0xff]   ;;  %v255_v49 = vrot.slane %v3019_v45, 1  ;;  %v2480_v50 = vld [vmem:[%s3396_s1 + $0x80] sm:$0xff]  }
  0x36   : > { %2088 = vmatprep.subr.bf16.mxu0 %v2463_v12  ;;  %2186 = vmatprep.mubr.bf16.mxu1 %v2854_v13  ;;  %v2968_v12 = vld [vmem:[%s2759_s5 + $0xc8] sm:$0xff]  ;;  %v2481_v55 = vld [vmem:[%s3396_s1 + $0x1e0] sm:$0xff]   ;;  %v3045_v2 = vpack.c.bf16 %v2881_v26, %v2878_v25  ;;  %v292_v26 = vrot.slane %v2957_v7, 1 }
  0x37   : > { %v450_v16 = vrot.slane %v2968_v12, 2  ;;  %v2483_v25 = vld [vmem:[%s3396_s1 + $0x88] sm:$0xff]  }
  0x38   : > { %2009 = vmatpush3.bf16.msra.mxu1 %v2461_v63  ;;  %2089 = vmatpush3.bf16.msra.mxu0 %v2465_v19  ;;  %v2939_v63 = vpack.c.bf16 %v278_v51, %v276_v48  ;;  %v452_v19 = vrot.slane %v2971_v14, 2  ;;  %v254_v48 = vrot.slane %v3016_v44, 1 }
  0x39   : > { %2010 = vmatprep.subr.bf16.mxu1 %v2462_v8  ;;  %2090 = vmatprep.subr.bf16.mxu0 %v2469_v47  ;;  %v346_v8 = vrot.slane %v2946_v0, 2  ;;  %v451_v28 = vsel %vm310_vm1, %v449_v15, %v450_v16  ;;  %v3024_v47 = vld [vmem:[%s2759_s5 + $0x10] sm:$0x3]  ;;  %v290_v15 = vrot.slane %v2954_v6, 1 }
  0x3a   : > { %v453_v29 = vsel %vm310_vm1, %v450_v16, %v452_v19  ;;  %v257_v39 = vrot.slane %v3024_v47, 1  ;;  %v256_v51 = vsel %vm253_vm0, %v254_v48, %v255_v49  ;;  %v2485_v16 = vld [vmem:[%s3396_s1 + $0x1a8] sm:$0xff]   ;;  %v2487_v19 = vld [vmem:[%s3396_s1 + $0x1f0] sm:$0xff]  }
  0x3b   : > { %693 = vmatmul.mubr.bf16.gmra.mrb[4].mxu0 %v2862_v17  ;;  %2187 = vmatmul.mubr.bf16.gmra.mrb[4].mxu1 %v2864_v18  ;;  %v348_v20 = vsel %vm310_vm1, %v346_v8, %v347_v10  ;;  %v2995_v32 = vpack.c.bf16 %v453_v29, %v451_v28  ;;  %v289_v8 = vrot.slane %v2946_v0, 1  ;;  %v443_v28 = vrot.slane %v2968_v12, 1  ;;  %v2489_v29 = vld [vmem:[%s3396_s1 + $0x98] sm:$0xff]  }
  0x3c   : > { %2011 = vmatpush3.bf16.msra.mxu1 %v2464_v21  ;;  %700 = vmatprep.mubr.bf16.mxu0 %v2902_v37  ;;  %v350_v21 = vsel %vm310_vm1, %v347_v10, %v349_v11  ;;  %v2484_v11 = vld [vmem:[%s3396_s1 + $0x1e8] sm:$0xff]  }
  0x3d   : > { %2012 = vmatprep.subr.bf16.mxu1 %v2466_v23  ;;  %2190 = vmatprep.mubr.bf16.mxu1 %v2923_v52  ;;  %v281_v23 = vsel %vm253_vm0, %v279_v60, %v280_v1  ;;  %v2984_v27 = vpack.c.bf16 %v350_v21, %v348_v20  ;;  %v258_v60 = vsel %vm253_vm0, %v255_v49, %v257_v39  ;;  %v2486_v21 = vld [vmem:[%s3396_s1 + $0x90] sm:$0xff]  }
  0x3e   : > { %2091 = vmatpush3.bf16.msra.mxu0 %v2471_v58  ;;  %v3005_v40 = vpack.c.bf16 %v283_v24, %v281_v23  ;;  %v286_v58 = vsel %vm253_vm0, %v284_v34, %v285_v3  ;;  %v368_v1 = vpack.c.bf16 %v258_v60, %v256_v51  ;;  %v291_v7 = vsel %vm253_vm0, %v289_v8, %v290_v15 }
  0x3f   : > { %v293_v20 = vsel %vm253_vm0, %v290_v15, %v292_v26  ;;  %v3079_v23 = vpack.c.bf16 %v2898_v36, %v2895_v35  ;;  %v2490_v35 = vld [vmem:[%s3396_s1 + $0x1f8] sm:$0xff]   ;;  %v3145_v60 = vpack.c.bf16 %v2968_v12, %v2961_v9  ;;  %v312_v15 = vrot.slane %v3019_v45, 2 }
  0x40   : > { %2013 = vmatpush3.bf16.msra.mxu1 %v2467_v30  ;;  %v2475_v30 = vld [vmem:[%s3396_s1 + $0x1d8] sm:$0xff]   ;;  %v3082_v24 = vpack.c.bf16 %v293_v20, %v291_v7 }
  0x41   : > { %2014 = vmatprep.subr.bf16.mxu1 %v2468_v43  ;;  %2092 = vmatprep.subr.bf16.mxu0 %v2475_v30  ;;  %v2479_v43 = vld [vmem:[%s3396_s1 + $0x38] sm:$0xff]   ;;  %v445_v30 = vrot.slane %v2971_v14, 1 }
  0x42   : > { %2093 = vmatpush3.bf16.msra.mxu0 %v2477_v38  ;;  %v2491_v36 = vld [vmem:[%s3396_s1 + $0x1b8] sm:$0xff]   ;;  %v3111_v38 = vpack.c.bf16 %v2954_v6, %v2946_v0  ;;  %v228_v0 = vld [vmem:[%s2759_s5 + $0xe8] sm:$0x3] }
  0x43   : > { %701 = vmatmul.mubr.bf16.gmra.mrb[8].mxu0 %v2928_v56  ;;  %2191 = vmatmul.mubr.bf16.gmra.mrb[8].mxu1 %v2930_v57  ;;  %v446_v34 = vsel %vm253_vm0, %v443_v28, %v445_v30  ;;  %v1190_v49 = vrot.slane %v228_v0, 1  ;;  %v1197_v51 = vrot.slane %v228_v0, 2  ;;  %v2499_v12 = vld [vmem:[%s3396_s1 + $0x218] sm:$0xff]  }
  0x44   : > { %2015 = vmatpush3.bf16.msra.mxu1 %v2470_v62  ;;  %708 = vmatprep.mubr.bf16.mxu0 %v2939_v63  ;;  %v288_v62 = vsel %vm253_vm0, %v285_v3, %v287_v42  ;;  %v3120_v42 = vld [vmem:[%s2759_s5 + $0xd8] sm:$0xff] }
  0x45   : > { %2016 = vmatprep.subr.bf16.mxu1 %v2472_v61  ;;  %2194 = vmatprep.mubr.bf16.mxu1 %v2984_v27  ;;  %v2482_v61 = vld [vmem:[%s3396_s1 + $0x1a0] sm:$0xff]   ;;  %v3050_v10 = vpack.c.bf16 %v288_v62, %v286_v58  ;;  %v1187_v6 = vrot.slane %v3120_v42, 1  ;;  %v1194_v39 = vrot.slane %v3120_v42, 2 }
  0x46   : > { %2094 = vmatprep.subr.bf16.mxu0 %v2481_v55  ;;  %v2496_v55 = vld [vmem:[%s3396_s1 + $0xb0] sm:$0xff]  }
  0x47   : > { %2095 = vmatpush3.bf16.msra.mxu0 %v2482_v61 }
  0x48   : > { %2017 = vmatpush3.bf16.msra.mxu1 %v2473_v5  ;;  %v367_v5 = vpack.c.bf16 %v3019_v45, %v3016_v44  ;;  %2096 = vmatprep.subr.bf16.mxu0 %v2484_v11  ;;  %v2498_v11 = vld [vmem:[%s3396_s1 + $0xb8] sm:$0xff]   ;;  %v2502_v45 = vld [vmem:[%s3396_s1 + $0x230] sm:$0xff]  }
  0x49   : > { %2018 = vmatprep.subr.bf16.mxu1 %v2474_v22  ;;  %v2488_v22 = vld [vmem:[%s3396_s1 + $0x1b0] sm:$0xff]  }
  0x4b   : > { %709 = vmatmul.mubr.bf16.gmra.mrb[12].mxu0 %v2993_v31  ;;  %2195 = vmatmul.mubr.bf16.gmra.mrb[12].mxu1 %v2995_v32 }
  0x4c   : > { %2019 = vmatpush3.bf16.msra.mxu1 %v2476_v33  ;;  %716 = vmatprep.mubr.bf16.mxu0 %v3005_v40  ;;  %v3100_v33 = vld [vmem:[%s3396_s1 + $0x200] sm:$0xff]  }
  0x4d   : > { %2020 = vmatprep.subr.bf16.mxu1 %v2478_v4  ;;  %1022 = vmatprep.mubr.bf16.mxu1 %v368_v1  ;;  %v2494_v4 = vld [vmem:[%s3396_s1 + $0xa8] sm:$0xff]  }
  0x4e   : > { %2097 = vmatpush3.bf16.msra.mxu0 %v2485_v16 }
  0x4f   : > { %2098 = vmatprep.subr.bf16.mxu0 %v2487_v19 }
  0x50   : > { %2021 = vmatpush3.bf16.msra.mxu1 %v2479_v43  ;;  %v3125_v43 = vld [vmem:[%s2759_s5 + $0xe0] sm:$0xff]  ;;  %s2504_s5 = scalar_lea.vmem %s3331_s27, 2048 }
  0x51   : > { %2198 = vmatprep.subr.bf16.mxu1 %v2480_v50  ;;  %v1188_v48 = vrot.slane %v3125_v43, 1  ;;  %p2505_p13 = scmp.ne.s32.totalorder %s3331_s27, %s2504_s5  ;;  %p2512_p4 = scmp.lt.s32.totalorder %s2510_s9, %s2504_s5 }
  0x52   : > { %2099 = vmatpush3.bf16.msra.mxu0 %v2488_v22 }
  0x53   : > { %717 = vmatmul.mubr.bf16.gmra.mrb[16].mxu0 %v3045_v2  ;;  %1023 = vmatmul.mubr.bf16.vlgmr.msra.gmra.mrb[16].mxu1 %v367_v5  ;;  %v3138_v58 = vsel %vm253_vm0, %v1187_v6, %v1188_v48  ;;  %v3141_v62 = vsel %vm253_vm0, %v1188_v48, %v1190_v49  ;;  %p2506_p0 = pnand %p2505_p13, %p2674_p3  ;;  %p2513_p5 = por %p2512_p4, %p2511_p2 }
  0x54   : > { %2199 = vmatpush3.bf16.msra.mxu1 %v2480_v50  ;;  %724 = vmatprep.mubr.bf16.mxu0 %v3050_v10  ;;  %v1195_v50 = vrot.slane %v3125_v43, 2  ;;  %v1202_v61 = vpack.c.bf16 %v3141_v62, %v3138_v58 }
  0x55   : > { %1030 = vmatprep.mubr.bf16.mxu1 %v2787_v41  ;;  %2200 = vmatprep.subr.bf16.mxu1 %v2483_v25  ;;  %v442_v41 = vrot.slane %v2961_v9, 1  ;;  %v2495_v9 = vld [vmem:[%s3396_s1 + $0x208] sm:$0xff]   ;;  %p2507_p1 = pneg %p2506_p0 }
  0x56   : > { %2100 = vmatprep.subr.bf16.mxu0 %v2490_v35  ;;  %v3150_v1 = vsel %vm310_vm1, %v1194_v39, %v1195_v50  ;;  %v3153_v5 = vsel %vm310_vm1, %v1195_v50, %v1197_v51 }
  0x57   : > { %v444_v14 = vsel %vm253_vm0, %v442_v41, %v443_v28  ;;  %2101 = vmatpush3.bf16.msra.mxu0 %v2491_v36  ;;  %v1203_v8 = vpack.c.bf16 %v3153_v5, %v3150_v1  ;;  %p2514_p6 = pnand %p2513_p5, %p2507_p1 }
  0x58   : > { %2201 = vmatpush3.bf16.msra.mxu1 %v2483_v25  ;;  %2230 = vmatprep.subr.bf16.mxu0 %v3100_v33  ;;  %v3114_v3 = vpack.c.bf16 %v446_v34, %v444_v14  ;;  %v314_v25 = vrot.slane %v3024_v47, 2 }
  0x59   : > { %2202 = vmatprep.subr.bf16.mxu1 %v2486_v21 }
  0x5b   : > { %725 = vmatmul.mubr.bf16.gmra.mrb[20].mxu0 %v3079_v23  ;;  %1031 = vmatmul.mubr.bf16.gmra.mrb[20].mxu1 %v2808_v53  ;;  %v2492_v53 = vld [vmem:[%s3396_s1 + $0xa0] sm:$0xff]  }
  0x5c   : > { %732 = vmatprep.mubr.bf16.mxu0 %v3082_v24  ;;  %1038 = vmatprep.mubr.bf16.mxu1 %v2820_v59 }
  0x5d   : > { %2203 = vmatpush3.bf16.msra.mxu1 %v2486_v21 }
  0x5e   : > { %2204 = vmatprep.subr.bf16.mxu1 %v2489_v29 }
  0x61   : > { %2205 = vmatpush3.bf16.msra.mxu1 %v2489_v29 }
  0x62   : > { %2206 = vmatprep.subr.bf16.mxu1 %v2492_v53 }
  0x63   : > { %733 = vmatmul.mubr.bf16.gmra.mrb[24].mxu0 %v3111_v38  ;;  %1039 = vmatmul.mubr.bf16.gmra.mrb[24].mxu1 %v2862_v17 }
  0x64   : > { %740 = vmatprep.mubr.bf16.mxu0 %v3114_v3  ;;  %1046 = vmatprep.mubr.bf16.mxu1 %v2902_v37 }
  0x65   : > { %2207 = vmatpush3.bf16.msra.mxu1 %v2492_v53 }
  0x66   : > { %2208 = vmatprep.subr.bf16.mxu1 %v2494_v4 }
  0x69   : > { %2209 = vmatpush3.bf16.msra.mxu1 %v2494_v4 }
  0x6a   : > { %2210 = vmatprep.subr.bf16.mxu1 %v2496_v55 }
  0x6b   : > { %741 = vmatmul.mubr.bf16.gmra.mrb[28].mxu0 %v3145_v60  ;;  %1047 = vmatmul.mubr.bf16.gmra.mrb[28].mxu1 %v2928_v56 }
  0x6c   : > { %1054 = vmatprep.mubr.bf16.mxu1 %v2939_v63  ;;  %1429 = vmatprep.mubr.bf16.mxu0 %v2820_v59  ;;  %v2497_v59 = vld [vmem:[%s3396_s1 + $0x210] sm:$0xff]  }
  0x6d   : > { %2211 = vmatpush3.bf16.msra.mxu1 %v2496_v55 }
  0x6e   : > { %2212 = vmatprep.subr.bf16.mxu1 %v2498_v11 }
  0x71   : > { %2213 = vmatpush3.bf16.msra.mxu1 %v2498_v11 }
  0x72   : > { %2262 = vmatprep.subr.bf16.mxu1 %v3100_v33 }
  0x73   : > { %1055 = vmatmul.mubr.bf16.gmra.mrb[32].mxu1 %v2993_v31  ;;  %1430 = vmatmul.mubr.bf16.vlgmr.msra.gmra.mrb[32].mxu0 %v2862_v17  ;;  %v2500_v17 = vld [vmem:[%s3396_s1 + $0x220] sm:$0xff]  }
  0x74   : > { %2231 = vmatpush3.bf16.msra.mxu0 %v3100_v33  ;;  %1062 = vmatprep.mubr.bf16.mxu1 %v3005_v40 }
  0x75   : > { %1437 = vmatprep.mubr.bf16.mxu0 %v2902_v37  ;;  %2232 = vmatprep.subr.bf16.mxu0 %v2495_v9  ;;  %v311_v37 = vrot.slane %v3016_v44, 2  ;;  %v315_v44 = vsel %vm310_vm1, %v312_v15, %v314_v25 }
  0x78   : > { %2233 = vmatpush3.bf16.msra.mxu0 %v2495_v9 }
  0x79   : > { %2234 = vmatprep.subr.bf16.mxu0 %v2497_v59 }
  0x7b   : > { %1063 = vmatmul.mubr.bf16.gmra.mrb[36].mxu1 %v3045_v2  ;;  %1438 = vmatmul.mubr.bf16.gmra.mrb[36].mxu0 %v2928_v56  ;;  %v2501_v56 = vld [vmem:[%s3396_s1 + $0x228] sm:$0xff]  }
  0x7c   : > { %1070 = vmatprep.mubr.bf16.mxu1 %v3050_v10  ;;  %1445 = vmatprep.mubr.bf16.mxu0 %v2939_v63  ;;  %v313_v63 = vsel %vm310_vm1, %v311_v37, %v312_v15 }
  0x7d   : > { %2235 = vmatpush3.bf16.msra.mxu0 %v2497_v59  ;;  %v369_v47 = vpack.c.bf16 %v315_v44, %v313_v63 }
  0x7e   : > { %2236 = vmatprep.subr.bf16.mxu0 %v2499_v12 }
  0x81   : > { %2237 = vmatpush3.bf16.msra.mxu0 %v2499_v12 }
  0x82   : > { %2238 = vmatprep.subr.bf16.mxu0 %v2500_v17 }
  0x83   : > { %1071 = vmatmul.mubr.bf16.gmra.mrb[40].mxu1 %v3079_v23  ;;  %1446 = vmatmul.mubr.bf16.gmra.mrb[40].mxu0 %v2993_v31  ;;  %v2503_v31 = vld [vmem:[%s3396_s1 + $0x238] sm:$0xff]  }
  0x84   : > { %1078 = vmatprep.mubr.bf16.mxu1 %v3082_v24  ;;  %1453 = vmatprep.mubr.bf16.mxu0 %v3005_v40 }
  0x85   : > { %2239 = vmatpush3.bf16.msra.mxu0 %v2500_v17 }
  0x86   : > { %2240 = vmatprep.subr.bf16.mxu0 %v2501_v56 }
  0x89   : > { %2241 = vmatpush3.bf16.msra.mxu0 %v2501_v56 }
  0x8a   : > { %2242 = vmatprep.subr.bf16.mxu0 %v2502_v45 }
  0x8b   : > { %1079 = vmatmul.mubr.bf16.gmra.mrb[44].mxu1 %v3111_v38  ;;  %1454 = vmatmul.mubr.bf16.gmra.mrb[44].mxu0 %v3045_v2 }
  0x8c   : > { %2214 = vmatprep.mubr.bf16.mxu1 %v369_v47  ;;  %1461 = vmatprep.mubr.bf16.mxu0 %v3050_v10 }
  0x8d   : > { %2243 = vmatpush3.bf16.msra.mxu0 %v2502_v45 }
  0x8e   : > { %2244 = vmatprep.subr.bf16.mxu0 %v2503_v31 }
  0x91   : > { %2245 = vmatpush3.bf16.msra.mxu0 %v2503_v31 }
  0x93   : > { %2215 = vmatmul.mubr.bf16.vlgmr.msra.gmra.mrb[0].mxu1 %v2795_v46  ;;  %1462 = vmatmul.mubr.bf16.gmra.mrb[48].mxu0 %v3079_v23  ;;  %v1201_v46 = vpack.c.bf16 %v3125_v43, %v3120_v42 }
  0x94   : > { %2270 = vmatpush3.bf16.msra.mxu1 %v3100_v33  ;;  %2218 = vmatprep.mubr.bf16.mxu1 %v2810_v54 }
  0x95   : > { %2263 = vmatprep.subr.bf16.mxu1 %v2495_v9  ;;  %1469 = vmatprep.mubr.bf16.mxu0 %v3082_v24 }
  0x98   : > { %2271 = vmatpush3.bf16.msra.mxu1 %v2495_v9 }
  0x99   : > { %2264 = vmatprep.subr.bf16.mxu1 %v2497_v59 }
  0x9b   : > { %2219 = vmatmul.mubr.bf16.gmra.mrb[4].mxu1 %v2854_v13  ;;  %1470 = vmatmul.mubr.bf16.gmra.mrb[52].mxu0 %v3111_v38 }
  0x9c   : > { %2272 = vmatpush3.bf16.msra.mxu1 %v2497_v59  ;;  %2222 = vmatprep.mubr.bf16.mxu1 %v2864_v18 }
  0x9d   : > { %2265 = vmatprep.subr.bf16.mxu1 %v2499_v12  ;;  %1477 = vmatprep.mubr.bf16.mxu0 %v3114_v3 }
  0xa0   : > { %2273 = vmatpush3.bf16.msra.mxu1 %v2499_v12 }
  0xa1   : > { %2266 = vmatprep.subr.bf16.mxu1 %v2500_v17 }
  0xa3   : > { %2223 = vmatmul.mubr.bf16.gmra.mrb[8].mxu1 %v2923_v52  ;;  %1478 = vmatmul.mubr.bf16.gmra.mrb[56].mxu0 %v3145_v60 }
  0xa4   : > { %2274 = vmatpush3.bf16.msra.mxu1 %v2500_v17  ;;  %2226 = vmatprep.mubr.bf16.mxu1 %v2930_v57 }
  0xa5   : > { %2267 = vmatprep.subr.bf16.mxu1 %v2501_v56  ;;  %1485 = vmatprep.mubr.bf16.mxu0 %v1202_v61 }
  0xa8   : > { %2275 = vmatpush3.bf16.msra.mxu1 %v2501_v56 }
  0xa9   : > { %2268 = vmatprep.subr.bf16.mxu1 %v2502_v45 }
  0xab   : > { %2227 = vmatmul.mubr.bf16.gmra.mrb[12].mxu1 %v2984_v27  ;;  %1486 = vmatmul.mubr.bf16.gmra.mrb[60].mxu0 %v1201_v46 }
  0xac   : > { %2276 = vmatpush3.bf16.msra.mxu1 %v2502_v45  ;;  %2246 = vmatprep.mubr.bf16.mxu0 %v2810_v54 }
  0xad   : > { %2269 = vmatprep.subr.bf16.mxu1 %v2503_v31  ;;  %2254 = vmatprep.mubr.bf16.mxu1 %v2930_v57 }
  0xb0   : > { %2277 = vmatpush3.bf16.msra.mxu1 %v2503_v31 }
  0xb3   : > { %2247 = vmatmul.mubr.bf16.vlgmr.msra.gmra.mrb[64].mxu0 %v2854_v13  ;;  %2255 = vmatmul.mubr.bf16.vlgmr.msra.gmra.mrb[8].mxu1 %v2984_v27 }
  0xb4   : > { %2250 = vmatprep.mubr.bf16.mxu0 %v2864_v18  ;;  %2258 = vmatprep.mubr.bf16.mxu1 %v2995_v32 }
  0xbb   : > { %2251 = vmatmul.mubr.bf16.gmra.mrb[68].mxu0 %v2923_v52  ;;  %2259 = vmatmul.mubr.bf16.gmra.mrb[12].mxu1 %v1203_v8 }
 0x106   : > { %v1942_v40 = vpop.f32.mrb[0].mxu0 }
 0x107   : > { %v1943_v54 = vpop.f32.mrb[1].mxu0 }
 0x108   : > { %v1944_v2 = vadd.f32 %v1943_v54, %v1942_v40  ;;  %v1945_v10 = vpop.f32.mrb[2].mxu0 }
 0x109   : > { %v1946_v57 = vpop.f32.mrb[3].mxu0 }
 0x10a   : > { %v1947_v26 = vadd.f32 %v1946_v57, %v1945_v10 }
 0x10e   : > { %v1948_v16 = vpop.f32.mrb[4].mxu0 }
 0x10f   : > { %v1949_v13 = vpop.f32.mrb[5].mxu0 }
 0x110   : > { %v1950_v19 = vadd.f32 %v1949_v13, %v1948_v16  ;;  %v1951_v27 = vpop.f32.mrb[6].mxu0 }
 0x111   : > { %v1952_v7 = vpop.f32.mrb[7].mxu0 }
 0x112   : > { %v1953_v18 = vadd.f32 %v1952_v7, %v1951_v27 }
 0x116   : > { %v1954_v20 = vpop.f32.mrb[8].mxu0 }
 0x117   : > { %v1955_v32 = vpop.f32.mrb[9].mxu0 }
 0x118   : > { %v1956_v21 = vadd.f32 %v1955_v32, %v1954_v20  ;;  %v1957_v52 = vpop.f32.mrb[10].mxu0 }
 0x119   : > { %v1958_v22 = vpop.f32.mrb[11].mxu0 }
 0x11a   : > { %v1959_v23 = vadd.f32 %v1958_v22, %v1957_v52 }
 0x11e   : > { %v1960_v41 = vpop.f32.mrb[12].mxu0 }
 0x11f   : > { %v1961_v24 = vpop.f32.mrb[13].mxu0 }
 0x120   : > { %v1962_v28 = vadd.f32 %v1961_v24, %v1960_v41  ;;  %v1963_v29 = vpop.f32.mrb[14].mxu0 }
 0x121   : > { %v1964_v30 = vpop.f32.mrb[15].mxu0 }
 0x122   : > { %v1965_v35 = vadd.f32 %v1964_v30, %v1963_v29 }
 0x126   : > { %v1966_v36 = vpop.f32.mrb[16].mxu0  ;;  %v2022_v33 = vpop.f32.mrb[16].mxu1 }
 0x127   : > { %v1967_v14 = vpop.f32.mrb[17].mxu0  ;;  %v2023_v34 = vpop.f32.mrb[17].mxu1 }
 0x128   : > { %v1968_v53 = vadd.f32 %v1967_v14, %v1966_v36  ;;  %v2024_v38 = vadd.f32 %v2023_v34, %v2022_v33  ;;  %v1969_v3 = vpop.f32.mrb[18].mxu0  ;;  %v2025_v4 = vpop.f32.mrb[18].mxu1 }
 0x129   : > { %v1970_v42 = vpop.f32.mrb[19].mxu0  ;;  %v2026_v43 = vpop.f32.mrb[19].mxu1 }
 0x12a   : > { %v1971_v0 = vadd.f32 %v1970_v42, %v1969_v3  ;;  %v2027_v6 = vadd.f32 %v2026_v43, %v2025_v4  ;;  %v3235_v48 = vadd.f32 %v2024_v38, %v1944_v2 }
 0x12c   : > { %v3237_v49 = vadd.f32 %v2027_v6, %v1947_v26 }
 0x12e   : > { %v1972_v39 = vpop.f32.mrb[20].mxu0  ;;  %v2028_v50 = vpop.f32.mrb[20].mxu1 }
 0x12f   : > { %v1973_v51 = vpop.f32.mrb[21].mxu0  ;;  %v2029_v55 = vpop.f32.mrb[21].mxu1 }
 0x130   : > { %v1974_v58 = vadd.f32 %v1973_v51, %v1972_v39  ;;  %v2030_v62 = vadd.f32 %v2029_v55, %v2028_v50  ;;  %v1975_v60 = vpop.f32.mrb[22].mxu0  ;;  %v2031_v61 = vpop.f32.mrb[22].mxu1 }
 0x131   : > { %v1976_v1 = vpop.f32.mrb[23].mxu0  ;;  %v2032_v5 = vpop.f32.mrb[23].mxu1 }
 0x132   : > { %v1977_v8 = vadd.f32 %v1976_v1, %v1975_v60  ;;  %v2033_v11 = vadd.f32 %v2032_v5, %v2031_v61  ;;  %v3239_v9 = vadd.f32 %v2030_v62, %v1950_v19 }
 0x134   : > { %v3241_v59 = vadd.f32 %v2033_v11, %v1953_v18 }
 0x136   : > { %v1978_v12 = vpop.f32.mrb[24].mxu0  ;;  %v2034_v17 = vpop.f32.mrb[24].mxu1 }
 0x137   : > { %v1979_v37 = vpop.f32.mrb[25].mxu0  ;;  %v2035_v15 = vpop.f32.mrb[25].mxu1 }
 0x138   : > { %v1980_v25 = vadd.f32 %v1979_v37, %v1978_v12  ;;  %v2036_v56 = vadd.f32 %v2035_v15, %v2034_v17  ;;  %v1981_v63 = vpop.f32.mrb[26].mxu0  ;;  %v2037_v44 = vpop.f32.mrb[26].mxu1 }
 0x139   : > { %v1982_v45 = vpop.f32.mrb[27].mxu0  ;;  %v2038_v47 = vpop.f32.mrb[27].mxu1 }
 0x13a   : > { %v1983_v31 = vadd.f32 %v1982_v45, %v1981_v63  ;;  %v2039_v46 = vadd.f32 %v2038_v47, %v2037_v44  ;;  %v3243_v40 = vadd.f32 %v2036_v56, %v1956_v21 }
 0x13c   : > { %v3245_v54 = vadd.f32 %v2039_v46, %v1959_v23 }
 0x13e   : > { %v1984_v2 = vpop.f32.mrb[28].mxu0  ;;  %v2040_v10 = vpop.f32.mrb[28].mxu1 }
 0x13f   : > { %v1985_v57 = vpop.f32.mrb[29].mxu0  ;;  %v2041_v26 = vpop.f32.mrb[29].mxu1 }
 0x140   : > { %v1986_v16 = vadd.f32 %v1985_v57, %v1984_v2  ;;  %v2042_v13 = vadd.f32 %v2041_v26, %v2040_v10  ;;  %v1987_v19 = vpop.f32.mrb[30].mxu0  ;;  %v2043_v27 = vpop.f32.mrb[30].mxu1 }
 0x141   : > { %v1988_v7 = vpop.f32.mrb[31].mxu0  ;;  %v2044_v18 = vpop.f32.mrb[31].mxu1 }
 0x142   : > { %v1989_v20 = vadd.f32 %v1988_v7, %v1987_v19  ;;  %v2045_v32 = vadd.f32 %v2044_v18, %v2043_v27  ;;  %v3247_v52 = vadd.f32 %v2042_v13, %v1962_v28 }
 0x144   : > { %v3249_v22 = vadd.f32 %v2045_v32, %v1965_v35 }
 0x146   : > { %v2046_v21 = vpop.f32.mrb[32].mxu1  ;;  %v2102_v41 = vpop.f32.mrb[32].mxu0 }
 0x147   : > { %v2047_v23 = vpop.f32.mrb[33].mxu1  ;;  %v2103_v24 = vpop.f32.mrb[33].mxu0 }
 0x148   : > { %v2048_v29 = vadd.f32 %v2047_v23, %v2046_v21  ;;  %v3251_v30 = vadd.f32 %v2103_v24, %v2102_v41  ;;  %v2049_v36 = vpop.f32.mrb[34].mxu1  ;;  %v2105_v33 = vpop.f32.mrb[34].mxu0 }
 0x149   : > { %v2050_v14 = vpop.f32.mrb[35].mxu1  ;;  %v2106_v34 = vpop.f32.mrb[35].mxu0 }
 0x14a   : > { %v2313_v38 = vadd.f32 %v2048_v29, %v1968_v53  ;;  %v2051_v3 = vadd.f32 %v2050_v14, %v2049_v36  ;;  %v2107_v4 = vadd.f32 %v2106_v34, %v2105_v33 }
 0x14c   : > { %v2319_v42 = vadd.f32 %v2051_v3, %v1971_v0 }
 0x14e   : > { %v2052_v43 = vpop.f32.mrb[36].mxu1  ;;  %v2108_v28 = vpop.f32.mrb[36].mxu0 }
 0x14f   : > { %v2053_v6 = vpop.f32.mrb[37].mxu1  ;;  %v2109_v35 = vpop.f32.mrb[37].mxu0 }
 0x150   : > { %v2054_v39 = vadd.f32 %v2053_v6, %v2052_v43  ;;  %v2110_v50 = vadd.f32 %v2109_v35, %v2108_v28  ;;  %v2055_v51 = vpop.f32.mrb[38].mxu1  ;;  %v2111_v55 = vpop.f32.mrb[38].mxu0 }
 0x151   : > { %v2056_v62 = vpop.f32.mrb[39].mxu1  ;;  %v2112_v60 = vpop.f32.mrb[39].mxu0 }
 0x152   : > { %v3253_v61 = vadd.f32 %v2054_v39, %v1974_v58  ;;  %v2057_v1 = vadd.f32 %v2056_v62, %v2055_v51  ;;  %v2113_v5 = vadd.f32 %v2112_v60, %v2111_v55 }
 0x154   : > { %v3255_v11 = vadd.f32 %v2057_v1, %v1977_v8 }
 0x156   : > { %v2058_v53 = vpop.f32.mrb[40].mxu1  ;;  %v2114_v12 = vpop.f32.mrb[40].mxu0 }
 0x157   : > { %v2059_v17 = vpop.f32.mrb[41].mxu1  ;;  %v2115_v0 = vpop.f32.mrb[41].mxu0 }
 0x158   : > { %v2060_v37 = vadd.f32 %v2059_v17, %v2058_v53  ;;  %v2116_v15 = vadd.f32 %v2115_v0, %v2114_v12  ;;  %v2061_v56 = vpop.f32.mrb[42].mxu1  ;;  %v2117_v63 = vpop.f32.mrb[42].mxu0 }
 0x159   : > { %v2062_v44 = vpop.f32.mrb[43].mxu1  ;;  %v2118_v45 = vpop.f32.mrb[43].mxu0 }
 0x15a   : > { %v3257_v47 = vadd.f32 %v2060_v37, %v1980_v25  ;;  %v2063_v46 = vadd.f32 %v2062_v44, %v2061_v56  ;;  %v2119_v2 = vadd.f32 %v2118_v45, %v2117_v63 }
 0x15c   : > { %v2331_v58 = vadd.f32 %v2063_v46, %v1983_v31 }
 0x15e   : > { %v2064_v10 = vpop.f32.mrb[44].mxu1  ;;  %v2120_v57 = vpop.f32.mrb[44].mxu0 }
 0x15f   : > { %v2065_v26 = vpop.f32.mrb[45].mxu1  ;;  %v2121_v8 = vpop.f32.mrb[45].mxu0 }
 0x160   : > { %v2066_v13 = vadd.f32 %v2065_v26, %v2064_v10  ;;  %v2122_v19 = vadd.f32 %v2121_v8, %v2120_v57  ;;  %v2067_v27 = vpop.f32.mrb[46].mxu1  ;;  %v2123_v7 = vpop.f32.mrb[46].mxu0 }
 0x161   : > { %v2068_v18 = vpop.f32.mrb[47].mxu1  ;;  %v2124_v32 = vpop.f32.mrb[47].mxu0 }
 0x162   : > { %v2322_v21 = vadd.f32 %v2066_v13, %v1986_v16  ;;  %v2069_v41 = vadd.f32 %v2068_v18, %v2067_v27  ;;  %v2125_v23 = vadd.f32 %v2124_v32, %v2123_v7  ;;  %v3287_v32 = vld [vmem:[%s3397_s2] ss:$0 sm:$0xff] }
 0x164   : > { %v2328_v24 = vadd.f32 %v2069_v41, %v1989_v20 }
 0x166   : > { %v2216_v29 = vpop.f32.mrb[0].mxu1  ;;  %v2126_v25 = vpop.f32.mrb[48].mxu0 }
 0x167   : > { %v2279_v36 = vadd.f32 %v3239_v9, %v2216_v29  ;;  %v1121_v33 = vpop.f32.mrb[1].mxu1  ;;  %v2127_v31 = vpop.f32.mrb[49].mxu0 }
 0x168   : > { %v2283_v14 = vadd.f32 %v3235_v48, %v1121_v33  ;;  %v2128_v34 = vadd.f32 %v2127_v31, %v2126_v25  ;;  %v2217_v3 = vpop.f32.mrb[2].mxu1  ;;  %v2129_v43 = vpop.f32.mrb[50].mxu0 }
 0x169   : > { %v2287_v28 = vadd.f32 %v3241_v59, %v2217_v3  ;;  %v1124_v6 = vpop.f32.mrb[3].mxu1  ;;  %v2130_v35 = vpop.f32.mrb[51].mxu0  ;;  %v2280_v39 = vadd.f32 %v2279_v36, %v2110_v50 }
 0x16a   : > { %v2291_v16 = vadd.f32 %v3237_v49, %v1124_v6  ;;  %v2131_v51 = vadd.f32 %v2130_v35, %v2129_v43  ;;  %v2284_v20 = vadd.f32 %v2283_v14, %v3251_v30  ;;  %v2314_v55 = vadd.f32 %v2313_v38, %v2128_v34 }
 0x16b   : > { %v2288_v62 = vadd.f32 %v2287_v28, %v2113_v5 }
 0x16c   : > { %v2292_v9 = vadd.f32 %v2291_v16, %v2107_v4  ;;  %v2320_v60 = vadd.f32 %v2319_v42, %v2131_v51 }
 0x16e   : > { %v2220_v1 = vpop.f32.mrb[4].mxu1  ;;  %v2132_v53 = vpop.f32.mrb[52].mxu0 }
 0x16f   : > { %v2295_v48 = vadd.f32 %v3247_v52, %v2220_v1  ;;  %v1137_v12 = vpop.f32.mrb[5].mxu1  ;;  %v2133_v17 = vpop.f32.mrb[53].mxu0 }
 0x170   : > { %v2299_v59 = vadd.f32 %v3243_v40, %v1137_v12  ;;  %v2134_v0 = vadd.f32 %v2133_v17, %v2132_v53  ;;  %v2221_v37 = vpop.f32.mrb[6].mxu1  ;;  %v2135_v50 = vpop.f32.mrb[54].mxu0 }
 0x171   : > { %v2303_v49 = vadd.f32 %v3249_v22, %v2221_v37  ;;  %v1140_v56 = vpop.f32.mrb[7].mxu1  ;;  %v2136_v63 = vpop.f32.mrb[55].mxu0  ;;  %v3267_v30 = vadd.f32 %v2295_v48, %v2122_v19 }
 0x172   : > { %v2307_v38 = vadd.f32 %v3245_v54, %v1140_v56  ;;  %v2137_v4 = vadd.f32 %v2136_v63, %v2135_v50  ;;  %v2311_v42 = vadd.f32 %v3253_v61, %v2134_v0  ;;  %v3271_v5 = vadd.f32 %v2299_v59, %v2116_v15 }
 0x173   : > { %v3273_v52 = vadd.f32 %v2303_v49, %v2125_v23 }
 0x174   : > { %v2317_v40 = vadd.f32 %v3255_v11, %v2137_v4  ;;  %v3276_v44 = vadd.f32 %v2307_v38, %v2119_v2 }
 0x176   : > { %v2138_v45 = vpop.f32.mrb[56].mxu0 }
 0x177   : > { %v2139_v22 = vpop.f32.mrb[57].mxu0 }
 0x178   : > { %v2140_v46 = vadd.f32 %v2139_v22, %v2138_v45  ;;  %v2141_v10 = vpop.f32.mrb[58].mxu0 }
 0x179   : > { %v2142_v57 = vpop.f32.mrb[59].mxu0 }
 0x17a   : > { %v2143_v26 = vadd.f32 %v2142_v57, %v2141_v10  ;;  %v2326_v54 = vadd.f32 %v3257_v47, %v2140_v46 }
 0x17c   : > { %v3279_v8 = vadd.f32 %v2331_v58, %v2143_v26 }
 0x17e   : > { %v2144_v61 = vpop.f32.mrb[60].mxu0 }
 0x17f   : > { %v2145_v15 = vpop.f32.mrb[61].mxu0 }
 0x180   : > { %v2146_v13 = vadd.f32 %v2145_v15, %v2144_v61  ;;  %v2147_v19 = vpop.f32.mrb[62].mxu0 }
 0x181   : > { %v2148_v27 = vpop.f32.mrb[63].mxu0 }
 0x182   : > { %v2149_v11 = vadd.f32 %v2148_v27, %v2147_v19  ;;  %v2323_v2 = vadd.f32 %v2322_v21, %v2146_v13 }
 0x184   : > { %v2329_v7 = vadd.f32 %v2328_v24, %v2149_v11 }
 0x186   : > { %v2248_v18 = vpop.f32.mrb[64].mxu0  ;;  %v2256_v47 = vpop.f32.mrb[8].mxu1 }
 0x187   : > { %v2281_v58 = vadd.f32 %v2280_v39, %v2248_v18  ;;  %v2312_v41 = vadd.f32 %v2311_v42, %v2256_v47  ;;  %v1528_v23 = vpop.f32.mrb[65].mxu0  ;;  %v1560_v29 = vpop.f32.mrb[9].mxu1 }
 0x188   : > { %v2285_v25 = vadd.f32 %v2284_v20, %v1528_v23  ;;  %v2315_v36 = vadd.f32 %v2314_v55, %v1560_v29  ;;  %v2249_v33 = vpop.f32.mrb[66].mxu0  ;;  %v2257_v21 = vpop.f32.mrb[10].mxu1 }
 0x189   : > { %v1616_v24 = vadd.f32 %v2281_v58, %v3287_v32  ;;  %v1624_v31 = vadd.f32 %v2312_v41, %v3287_v32  ;;  %v2289_v14 = vadd.f32 %v2288_v62, %v2249_v33  ;;  %v2318_v34 = vadd.f32 %v2317_v40, %v2257_v21  ;;  %v1531_v3 = vpop.f32.mrb[67].mxu0  ;;  %v1563_v43 = vpop.f32.mrb[11].mxu1 }
 0x18a   : > { %v1614_v28 = vadd.f32 %v2285_v25, %v3287_v32  ;;  %v1622_v6 = vadd.f32 %v2315_v36, %v3287_v32  ;;  %v2293_v35 = vadd.f32 %v2292_v9, %v1531_v3  ;;  %v2321_v39 = vadd.f32 %v2320_v60, %v1563_v43 }
 0x18b   : > { %1632 = vst [vmem:[%s3295_s20 + $0x10] sm:$0xff] %v1616_v24  ;;  %1640 = vst [vmem:[%s3295_s20 + $0x50] sm:$0xff] %v1624_v31  ;;  %v1617_v16 = vadd.f32 %v2289_v14, %v3287_v32  ;;  %v1625_v51 = vadd.f32 %v2318_v34, %v3287_v32 }
 0x18c   : > { %1630 = vst [vmem:[%s3295_s20] sm:$0xff] %v1614_v28  ;;  %1638 = vst [vmem:[%s3295_s20 + $0x40] sm:$0xff] %v1622_v6  ;;  %v1615_v20 = vadd.f32 %v2293_v35, %v3287_v32  ;;  %v1623_v55 = vadd.f32 %v2321_v39, %v3287_v32 }
 0x18d   : > { %1633 = vst [vmem:[%s3295_s20 + $0x18] sm:$0xff] %v1617_v16  ;;  %1641 = vst [vmem:[%s3295_s20 + $0x58] sm:$0xff] %v1625_v51 }
 0x18e   : > { %1631 = vst [vmem:[%s3295_s20 + $0x8] sm:$0xff] %v1615_v20  ;;  %1639 = vst [vmem:[%s3295_s20 + $0x48] sm:$0xff] %v1623_v55  ;;  %v2252_v62 = vpop.f32.mrb[68].mxu0  ;;  %v2260_v9 = vpop.f32.mrb[12].mxu1 }
 0x18f   : > { %v2297_v60 = vadd.f32 %v3267_v30, %v2252_v62  ;;  %v2324_v1 = vadd.f32 %v2323_v2, %v2260_v9  ;;  %v1544_v53 = vpop.f32.mrb[69].mxu0  ;;  %v1576_v48 = vpop.f32.mrb[13].mxu1 }
 0x190   : > { %v2301_v12 = vadd.f32 %v3271_v5, %v1544_v53  ;;  %v2327_v17 = vadd.f32 %v2326_v54, %v1576_v48  ;;  %v2253_v59 = vpop.f32.mrb[70].mxu0  ;;  %v2261_v0 = vpop.f32.mrb[14].mxu1 }
 0x191   : > { %v1620_v37 = vadd.f32 %v2297_v60, %v3287_v32  ;;  %v1628_v50 = vadd.f32 %v2324_v1, %v3287_v32  ;;  %v2305_v49 = vadd.f32 %v3273_v52, %v2253_v59  ;;  %v2330_v56 = vadd.f32 %v2329_v7, %v2261_v0  ;;  %v1547_v63 = vpop.f32.mrb[71].mxu0  ;;  %v1579_v30 = vpop.f32.mrb[15].mxu1 }
 0x192   : > { %v1618_v38 = vadd.f32 %v2301_v12, %v3287_v32  ;;  %v1626_v4 = vadd.f32 %v2327_v17, %v3287_v32  ;;  %v2309_v42 = vadd.f32 %v3276_v44, %v1547_v63  ;;  %v2333_v5 = vadd.f32 %v3279_v8, %v1579_v30 }
 0x193   : > { %1636 = vst [vmem:[%s3295_s20 + $0x30] sm:$0xff] %v1620_v37  ;;  %1644 = vst [vmem:[%s3295_s20 + $0x70] sm:$0xff] %v1628_v50  ;;  %v1621_v52 = vadd.f32 %v2305_v49, %v3287_v32  ;;  %v1629_v40 = vadd.f32 %v2330_v56, %v3287_v32 }
 0x194   : > { %1634 = vst [vmem:[%s3295_s20 + $0x20] sm:$0xff] %v1618_v38  ;;  %1642 = vst [vmem:[%s3295_s20 + $0x60] sm:$0xff] %v1626_v4  ;;  %v1619_v44 = vadd.f32 %v2309_v42, %v3287_v32  ;;  %v1627_v45 = vadd.f32 %v2333_v5, %v3287_v32 }
 0x195   : > { %1637 = vst [vmem:[%s3295_s20 + $0x38] sm:$0xff] %v1621_v52  ;;  %1645 = vst [vmem:[%s3295_s20 + $0x78] sm:$0xff] %v1629_v40 }
 0x196   : > { %1635 = vst [vmem:[%s3295_s20 + $0x28] sm:$0xff] %v1619_v44  ;;  %1643 = vst [vmem:[%s3295_s20 + $0x68] sm:$0xff] %v1627_v45 }
 0x197   : > { %2517 = shalt.err (!%p2514_p6)
}
 0x198   : > { %s2518_s7 = scalar_lea.hbm %s3329_s29, 2048  ;;  %s2522_s21 = scalar_lea.hbm %s3398_s3, 8192 }
 0x199   : > { %p2519_p7 = scmp.ne.s32.totalorder %s3329_s29, %s2518_s7  ;;  %p2523_p11 = scmp.lt.u32.totalorder %s3329_s29, %s3398_s3 }
 0x19a   : > { %p2524_p12 = scmp.lt.u32.totalorder %s2522_s21, %s2518_s7  ;;  %p2526_p0 = scmp.lt.u32.totalorder %s2518_s7, %s3329_s29 }
 0x19b   : > { %p2520_p9 = pnand %p2519_p7, %p2674_p3 }
 0x19c   : > { %p2525_p13 = por %p2524_p12, %p2523_p11 }
 0x19d   : > { %p2521_p10 = pneg %p2520_p9 }
 0x19e   : > { %p2527_p1 = por %p2526_p0, %p2525_p13 }
 0x1a0   : > { %p2528_p2 = pnand %p2527_p1, %p2521_p10 }
 0x1a2   : > { %2531 = shalt.err (!%p2528_p2)
}
 0x1a3   : > { %s2601_s16 = smov 128   ;;  %s2602_s24 = smov 8  }
 0x1a4   : > { %2359 = dma.vmem_to_hbm [thread:$0]  (%p2674_p3), %s3331_s27, 2048, %s3329_s29, %s3343_s4, %s2601_s16, %s2601_s16, %s2602_s24  }
 0x1a5 PF: > { %p2365_p4 = scmp.ge.s32.totalorder %s2598_s19, 2  ;;  %s1678_s28 = sand.u32 1, %s2570_s12  }
 0x1a6   : > { %s1679_s5 = scalar_lea.sflag [#allocation3], %s1678_s28 }
 0x1a7   : > { %p2362_p5 = pnand %p2365_p4, %p2683_p8 }
 0x1a9   : > { %2565 = dma.done.wait (!%p2362_p5), %s1679_s5, 2048  }
 0x1aa   : > { %2567 = vsyncadd (!%p2362_p5), %s1679_s5, 4294965248  ;;  %s16_s19 = sadd.s32 1, %s2598_s19   ;;  %s3401_s12 = smov %s2574_s13 }
 0x1ab   : > { %p13_p6 = scmp.ge.s32.totalorder %s16_s19, 6   ;;  %s3402_s13 = smov %s2578_s14 }
 0x1ac   : > { %s3403_s14 = smov %s2692_s30  ;;  %s3404_s15 = smov %s2590_s17 }
 0x1ad   : > { %s3405_s16 = smov %s2594_s18  ;;  %s3406_s17 = smov %s3409_s22 }
 0x1ae   : > { %s3407_s18 = smov %s3413_s23  ;;  %15 = sbr.rel (!%p13_p6) target bundleno = 5 (0x5), region = 69 }
 0x1b5   :  { %1684 = vsyncpa [#allocation3], 1 }
 0x1b6   :  { %1686 = vsyncpa [#allocation3 + $0x1], 1 }

</bundles_post_ra>
